<compile_context>
chip_gen: v7x
topology: tpu7x:2x2x1
jax: 0.10.0
libtpu: 0.0.40
codegen_flags: <defaults>
</compile_context>

<pallas_src>
import jax
import jax.numpy as jnp
from jax.experimental import pallas as pl
from jax.experimental.pallas import tpu as pltpu

LANE = 128        # vreg lane width (fast axis)
SUBLANE = 8       # vreg sublane width
NCORES = 2        # leading "parallel" grid axis (2 TCs on v7x; harmless on v5e/v6e)
TM_MAX = 8192     # max rows/tile: 8192x128 f32 = 4 MiB/input; 2 inputs x 2 bufs = 16 MiB
RC = 512          # strip-mine chunk rows: 512x128 f32 = 256 KiB per temporary
PAD_SENTINEL = -100.0  # sigmoid(-100) and log1p(exp(-100)) flush to 0 in f32, so
                       # sentinel logits (with zero targets) add ~0 to every sum


def _round_up(x, m):
    return -(-x // m) * m


def bce_dice_loss(logits, targets, eps: float = 1e-7):
    """BCEDiceLoss forward. logits/targets: same-shape float arrays -> f32 scalar."""
    assert logits.shape == targets.shape
    n = logits.size

    rows = -(-n // LANE)
    lane_pad = rows * LANE - n

    flat_x = logits.reshape(-1)
    flat_t = targets.reshape(-1)
    if lane_pad:
        # Only when n % 128 != 0: small unavoidable copy so we can present a
        # lane-dense (rows, 128) view; sentinel logits / zero targets make the
        # padded lanes contribute ~0 to every accumulated sum.
        flat_x = jnp.pad(flat_x, (0, lane_pad), constant_values=PAD_SENTINEL)
        flat_t = jnp.pad(flat_t, (0, lane_pad))
    x2d = flat_x.reshape(rows, LANE)
    t2d = flat_t.reshape(rows, LANE)

    # ---- static tile geometry --------------------------------------------
    rows_per_core = -(-rows // NCORES)
    if rows_per_core <= RC:
        rc = _round_up(rows_per_core, SUBLANE)
        tm = rc
    else:
        rc = RC
        tm = min(TM_MAX, _round_up(rows_per_core, rc))
    n_chunks = tm // rc
    total_tiles = -(-rows // tm)
    tiles_per_core = -(-total_tiles // NCORES)
    last_block = total_tiles - 1
    # True iff some tile overhangs `rows` or a core revisits a clamped tile;
    # only then is the in-kernel row-mask code emitted at all.
    need_mask = (NCORES * tiles_per_core * tm != rows)

    # ---- kernel (closure over the static geometry) ------------------------
    def kernel(x_ref, t_ref, part_ref, inter_acc, union_acc, bce_acc):
        c = pl.program_id(0)
        i = pl.program_id(1)

        @pl.when(i == 0)
        def _init():
            inter_acc[...] = jnp.zeros_like(inter_acc)
            union_acc[...] = jnp.zeros_like(union_acc)
            bce_acc[...] = jnp.zeros_like(bce_acc)

        def chunk(j, r0):
            x = x_ref[pl.ds(r0, rc), :].astype(jnp.float32)
            t = t_ref[pl.ds(r0, rc), :].astype(jnp.float32)
            if need_mask:
                # Rows at/after `rows` (tile overhang or a clamped duplicate
                # tile) hold garbage: replace with the sentinel so they
                # contribute ~0 to every sum.
                b = c * tiles_per_core + i            # unclamped logical block
                valid = rows - b * tm - j * rc        # valid rows in this chunk
                row_id = jax.lax.broadcasted_iota(jnp.int32, (rc, LANE), 0)
                m = row_id < valid
                x = jnp.where(m, x, PAD_SENTINEL)
                t = jnp.where(m, t, 0.0)

            # Share exp(-|x|) between sigmoid and the stable BCE log term.
            e = jnp.exp(-jnp.abs(x))                  # one EUP exp
            inv = 1.0 / (1.0 + e)                     # sigmoid(|x|), exact divide
            sig = jnp.where(x >= 0.0, inv, e * inv)   # sigmoid(x)
            bce = jnp.maximum(x, 0.0) - x * t + jnp.log1p(e)

            # Reduce (rc,128) -> (8,128) with pure vreg adds, then one tiny RMW.
            ns = rc // SUBLANE
            inter_acc[...] += jnp.sum((t * sig).reshape(ns, SUBLANE, LANE), axis=0)
            union_acc[...] += jnp.sum((t + sig).reshape(ns, SUBLANE, LANE), axis=0)
            bce_acc[...] += jnp.sum(bce.reshape(ns, SUBLANE, LANE), axis=0)

        if n_chunks == 1:
            chunk(0, 0)
        else:
            @pl.loop(0, n_chunks)
            def _chunks(j):
                chunk(j, pl.multiple_of(j * rc, SUBLANE))

        @pl.when(i == pl.num_programs(1) - 1)
        def _finalize():
            inter = jnp.sum(inter_acc[...])
            union = jnp.sum(union_acc[...])
            bce_s = jnp.sum(bce_acc[...])
            # Pack the 3 per-core partial sums into sublanes 0..2 of a
            # lane-dense (1, 8, 128) output block; the wrapper reads column 0.
            sub = jax.lax.broadcasted_iota(jnp.int32, (1, SUBLANE, LANE), 1)
            part_ref[...] = jnp.where(
                sub == 0, inter,
                jnp.where(sub == 1, union,
                          jnp.where(sub == 2, bce_s, 0.0)))

    # ---- specs / call ------------------------------------------------------
    if need_mask:
        def in_map(c, i):
            # Clamp so a DMA never starts past the array; clamped duplicate
            # tiles are fully masked in-kernel and contribute exactly 0.
            return (jnp.minimum(c * tiles_per_core + i, last_block), 0)
    else:
        def in_map(c, i):
            return (c * tiles_per_core + i, 0)

    tile_spec = pl.BlockSpec((tm, LANE), in_map)
    itemsize = x2d.dtype.itemsize + t2d.dtype.itemsize
    cost = pl.CostEstimate(
        flops=15 * n,
        transcendentals=2 * n,
        bytes_accessed=n * itemsize + NCORES * SUBLANE * LANE * 4,
    )

    parts = pl.pallas_call(
        kernel,
        out_shape=jax.ShapeDtypeStruct((NCORES, SUBLANE, LANE), jnp.float32),
        grid_spec=pltpu.PrefetchScalarGridSpec(
            num_scalar_prefetch=0,
            grid=(NCORES, tiles_per_core),
            in_specs=[tile_spec, tile_spec],
            out_specs=pl.BlockSpec((1, SUBLANE, LANE), lambda c, i: (c, 0, 0)),
            scratch_shapes=[pltpu.VMEM((SUBLANE, LANE), jnp.float32)] * 3,
        ),
        compiler_params=pltpu.CompilerParams(
            # NOTE: on v7x, pltpu.CORE_PARALLEL on the leading axis may be
            # required to guarantee a true 2-TC split; "parallel" kept for
            # portability across v5e/v6e/v7x.
            dimension_semantics=("parallel", "arbitrary"),
            vmem_limit_bytes=32 * 1024 * 1024,
        ),
        cost_estimate=cost,
    )(x2d, t2d)

    # Tiny final combine in plain JAX (NCORES partials each).
    inter = jnp.sum(parts[:, 0, 0])
    union = jnp.sum(parts[:, 1, 0])
    bce_sum = jnp.sum(parts[:, 2, 0])
    dice = 2.0 * inter / (union + eps)
    return (1.0 - dice) + bce_sum / n


def _reference(logits, targets, eps=1e-7):
    x = logits.astype(jnp.float32)
    t = targets.astype(jnp.float32)
    sig = jax.nn.sigmoid(x)
    intersection = jnp.sum(t * sig)
    union = jnp.sum(t) + jnp.sum(sig)
    dice = 2.0 * intersection / (union + eps)
    bce = jnp.mean(jnp.maximum(x, 0.0) - x * t + jnp.log1p(jnp.exp(-jnp.abs(x))))
    return (1.0 - dice) + bce


if __name__ == "__main__":
    key = jax.random.PRNGKey(0)
    k1, k2, k3, k4 = jax.random.split(key, 4)

    # NCHW: batch=2, channels=4, spatial=16x16 (n = 2048: fully aligned path).
    logits = jax.random.normal(k1, (2, 4, 16, 16), dtype=jnp.float32)
    targets = (jax.random.uniform(k2, (2, 4, 16, 16)) > 0.5).astype(jnp.float32)
    loss = jax.block_until_ready(bce_dice_loss(logits, targets))
    ref = jax.block_until_ready(_reference(logits, targets))
    assert jnp.allclose(loss, ref, rtol=1e-5, atol=1e-5), (loss, ref)

    # Row count not divisible by the tile (exercises the in-kernel boundary mask).
    logits2 = jax.random.normal(k3, (3, 5, 16, 16), dtype=jnp.float32)
    targets2 = (jax.random.uniform(k4, (3, 5, 16, 16)) > 0.5).astype(jnp.float32)
    loss2 = jax.block_until_ready(bce_dice_loss(logits2, targets2))
    ref2 = jax.block_until_ready(_reference(logits2, targets2))
    assert jnp.allclose(loss2, ref2, rtol=1e-5, atol=1e-5), (loss2, ref2)

    print("KERNEL_OK")
</pallas_src>

<mosaic_0001>
module attributes {stable_mosaic.version = 11 : i64} {
  func.func @kernel(%arg0: i32, %arg1: i32, %arg2: memref<8x128xf32, #tpu.memory_space<vmem>>, %arg3: memref<8x128xf32, #tpu.memory_space<vmem>>, %arg4: memref<1x8x128xf32, #tpu.memory_space<vmem>>, %arg5: memref<8x128xf32, #tpu.memory_space<vmem>>, %arg6: memref<8x128xf32, #tpu.memory_space<vmem>>, %arg7: memref<8x128xf32, #tpu.memory_space<vmem>>) attributes {dimension_semantics = [#tpu.dimension_semantics<parallel>, #tpu.dimension_semantics<arbitrary>], iteration_bounds = array<i64: 2, 1>, scalar_prefetch = 0 : i64, scratch_operands = 3 : i64, tpu.core_type = #tpu.core_type<tc>, window_params = [{transform_indices = @transform_0, window_bounds = array<i64: 8, 128>}, {transform_indices = @transform_1, window_bounds = array<i64: 8, 128>}, {transform_indices = @transform_2, window_bounds = array<i64: 1, 8, 128>}]} {
    %c0_i32 = arith.constant 0 : i32
    %0 = arith.cmpi eq, %arg1, %c0_i32 : i32
    %1 = arith.extui %0 : i1 to i32
    %c0_i32_0 = arith.constant 0 : i32
    %2 = arith.cmpi ne, %1, %c0_i32_0 : i32
    scf.if %2 {
      %cst_25 = arith.constant 0.000000e+00 : f32
      %43 = vector.broadcast %cst_25 : f32 to vector<8x128xf32>
      %c0_26 = arith.constant 0 : index
      %c0_27 = arith.constant 0 : index
      %44 = vector.load %arg5[%c0_26, %c0_27] : memref<8x128xf32, #tpu.memory_space<vmem>>, vector<8x128xf32>
      tpu.vector_store %arg5[%c0_26, %c0_27], %43 {strides = array<i32>} : memref<8x128xf32, #tpu.memory_space<vmem>>, vector<8x128xf32>,
      %cst_28 = arith.constant 0.000000e+00 : f32
      %45 = vector.broadcast %cst_28 : f32 to vector<8x128xf32>
      %c0_29 = arith.constant 0 : index
      %c0_30 = arith.constant 0 : index
      %46 = vector.load %arg6[%c0_29, %c0_30] : memref<8x128xf32, #tpu.memory_space<vmem>>, vector<8x128xf32>
      tpu.vector_store %arg6[%c0_29, %c0_30], %45 {strides = array<i32>} : memref<8x128xf32, #tpu.memory_space<vmem>>, vector<8x128xf32>,
      %cst_31 = arith.constant 0.000000e+00 : f32
      %47 = vector.broadcast %cst_31 : f32 to vector<8x128xf32>
      %c0_32 = arith.constant 0 : index
      %c0_33 = arith.constant 0 : index
      %48 = vector.load %arg7[%c0_32, %c0_33] : memref<8x128xf32, #tpu.memory_space<vmem>>, vector<8x128xf32>
      tpu.vector_store %arg7[%c0_32, %c0_33], %47 {strides = array<i32>} : memref<8x128xf32, #tpu.memory_space<vmem>>, vector<8x128xf32>,
    } else {
    }
    %c0 = arith.constant 0 : index
    %c0_1 = arith.constant 0 : index
    %3 = vector.load %arg2[%c0, %c0_1] : memref<8x128xf32, #tpu.memory_space<vmem>>, vector<8x128xf32>
    %c0_2 = arith.constant 0 : index
    %c0_3 = arith.constant 0 : index
    %4 = vector.load %arg3[%c0_2, %c0_3] : memref<8x128xf32, #tpu.memory_space<vmem>>, vector<8x128xf32>
    %5 = math.absf %3 : vector<8x128xf32>
    %cst = arith.constant 0.000000e+00 : f32
    %6 = vector.broadcast %cst : f32 to vector<8x128xf32>
    %7 = arith.subf %6, %5 : vector<8x128xf32>
    %8 = math.exp %7 : vector<8x128xf32>
    %cst_4 = arith.constant 1.000000e+00 : f32
    %9 = vector.broadcast %cst_4 : f32 to vector<8x128xf32>
    %10 = arith.addf %9, %8 : vector<8x128xf32>
    %cst_5 = arith.constant 1.000000e+00 : f32
    %11 = vector.broadcast %cst_5 : f32 to vector<8x128xf32>
    %12 = arith.divf %11, %10 : vector<8x128xf32>
    %cst_6 = arith.constant 0.000000e+00 : f32
    %13 = vector.broadcast %cst_6 : f32 to vector<8x128xf32>
    %14 = arith.cmpf oge, %3, %13 : vector<8x128xf32>
    %15 = arith.mulf %8, %12 : vector<8x128xf32>
    %16 = arith.select %14, %12, %15 : vector<8x128xi1>, vector<8x128xf32>
    %cst_7 = arith.constant 0.000000e+00 : f32
    %17 = vector.broadcast %cst_7 : f32 to vector<8x128xf32>
    %18 = arith.maximumf %3, %17 : vector<8x128xf32>
    %19 = arith.mulf %3, %4 : vector<8x128xf32>
    %20 = arith.subf %18, %19 : vector<8x128xf32>
    %21 = math.log1p %8 : vector<8x128xf32>
    %22 = arith.addf %20, %21 : vector<8x128xf32>
    %c0_8 = arith.constant 0 : index
    %c0_9 = arith.constant 0 : index
    %23 = vector.load %arg5[%c0_8, %c0_9] : memref<8x128xf32, #tpu.memory_space<vmem>>, vector<8x128xf32>
    %24 = arith.mulf %4, %16 : vector<8x128xf32>
    %25 = vector.shape_cast %24 : vector<8x128xf32> to vector<1x8x128xf32>
    %cst_10 = arith.constant dense<0.000000e+00> : vector<8x128xf32>
    %26 = vector.multi_reduction <add>, %25, %cst_10 [0] : vector<1x8x128xf32> to vector<8x128xf32>
    %27 = arith.addf %23, %26 : vector<8x128xf32>
    %c0_11 = arith.constant 0 : index
    %c0_12 = arith.constant 0 : index
    %28 = vector.load %arg5[%c0_11, %c0_12] : memref<8x128xf32, #tpu.memory_space<vmem>>, vector<8x128xf32>
    tpu.vector_store %arg5[%c0_11, %c0_12], %27 {strides = array<i32>} : memref<8x128xf32, #tpu.memory_space<vmem>>, vector<8x128xf32>,
    %c0_13 = arith.constant 0 : index
    %c0_14 = arith.constant 0 : index
    %29 = vector.load %arg6[%c0_13, %c0_14] : memref<8x128xf32, #tpu.memory_space<vmem>>, vector<8x128xf32>
    %30 = arith.addf %4, %16 : vector<8x128xf32>
    %31 = vector.shape_cast %30 : vector<8x128xf32> to vector<1x8x128xf32>
    %cst_15 = arith.constant dense<0.000000e+00> : vector<8x128xf32>
    %32 = vector.multi_reduction <add>, %31, %cst_15 [0] : vector<1x8x128xf32> to vector<8x128xf32>
    %33 = arith.addf %29, %32 : vector<8x128xf32>
    %c0_16 = arith.constant 0 : index
    %c0_17 = arith.constant 0 : index
    %34 = vector.load %arg6[%c0_16, %c0_17] : memref<8x128xf32, #tpu.memory_space<vmem>>, vector<8x128xf32>
    tpu.vector_store %arg6[%c0_16, %c0_17], %33 {strides = array<i32>} : memref<8x128xf32, #tpu.memory_space<vmem>>, vector<8x128xf32>,
    %c0_18 = arith.constant 0 : index
    %c0_19 = arith.constant 0 : index
    %35 = vector.load %arg7[%c0_18, %c0_19] : memref<8x128xf32, #tpu.memory_space<vmem>>, vector<8x128xf32>
    %36 = vector.shape_cast %22 : vector<8x128xf32> to vector<1x8x128xf32>
    %cst_20 = arith.constant dense<0.000000e+00> : vector<8x128xf32>
    %37 = vector.multi_reduction <add>, %36, %cst_20 [0] : vector<1x8x128xf32> to vector<8x128xf32>
    %38 = arith.addf %35, %37 : vector<8x128xf32>
    %c0_21 = arith.constant 0 : index
    %c0_22 = arith.constant 0 : index
    %39 = vector.load %arg7[%c0_21, %c0_22] : memref<8x128xf32, #tpu.memory_space<vmem>>, vector<8x128xf32>
    tpu.vector_store %arg7[%c0_21, %c0_22], %38 {strides = array<i32>} : memref<8x128xf32, #tpu.memory_space<vmem>>, vector<8x128xf32>,
    %c0_i32_23 = arith.constant 0 : i32
    %40 = arith.cmpi eq, %arg1, %c0_i32_23 : i32
    %41 = arith.extui %40 : i1 to i32
    %c0_i32_24 = arith.constant 0 : i32
    %42 = arith.cmpi ne, %41, %c0_i32_24 : i32
    scf.if %42 {
      %c0_25 = arith.constant 0 : index
      %c0_26 = arith.constant 0 : index
      %43 = vector.load %arg5[%c0_25, %c0_26] : memref<8x128xf32, #tpu.memory_space<vmem>>, vector<8x128xf32>
      %44 = vector.shape_cast %43 : vector<8x128xf32> to vector<1x8x128xf32>
      %cst_27 = arith.constant dense<0.000000e+00> : vector<1xf32>
      %45 = vector.multi_reduction <add>, %44, %cst_27 [1, 2] : vector<1x8x128xf32> to vector<1xf32>
      %46 = vector.shape_cast %45 : vector<1xf32> to vector<1x1x1xf32>
      %47 = vector.extract %46[0, 0, 0] : f32 from vector<1x1x1xf32>
      %c0_28 = arith.constant 0 : index
      %c0_29 = arith.constant 0 : index
      %48 = vector.load %arg6[%c0_28, %c0_29] : memref<8x128xf32, #tpu.memory_space<vmem>>, vector<8x128xf32>
      %49 = vector.shape_cast %48 : vector<8x128xf32> to vector<1x8x128xf32>
      %cst_30 = arith.constant dense<0.000000e+00> : vector<1xf32>
      %50 = vector.multi_reduction <add>, %49, %cst_30 [1, 2] : vector<1x8x128xf32> to vector<1xf32>
      %51 = vector.shape_cast %50 : vector<1xf32> to vector<1x1x1xf32>
      %52 = vector.extract %51[0, 0, 0] : f32 from vector<1x1x1xf32>
      %c0_31 = arith.constant 0 : index
      %c0_32 = arith.constant 0 : index
      %53 = vector.load %arg7[%c0_31, %c0_32] : memref<8x128xf32, #tpu.memory_space<vmem>>, vector<8x128xf32>
      %54 = vector.shape_cast %53 : vector<8x128xf32> to vector<1x8x128xf32>
      %cst_33 = arith.constant dense<0.000000e+00> : vector<1xf32>
      %55 = vector.multi_reduction <add>, %54, %cst_33 [1, 2] : vector<1x8x128xf32> to vector<1xf32>
      %56 = vector.shape_cast %55 : vector<1xf32> to vector<1x1x1xf32>
      %57 = vector.extract %56[0, 0, 0] : f32 from vector<1x1x1xf32>
      %58 = tpu.iota {dimensions = array<i32: 1>} : vector<1x8x128xi32>
      %c0_i32_34 = arith.constant 0 : i32
      %59 = vector.broadcast %c0_i32_34 : i32 to vector<1x8x128xi32>
      %60 = arith.cmpi eq, %58, %59 : vector<1x8x128xi32>
      %c1_i32 = arith.constant 1 : i32
      %61 = vector.broadcast %c1_i32 : i32 to vector<1x8x128xi32>
      %62 = arith.cmpi eq, %58, %61 : vector<1x8x128xi32>
      %c2_i32 = arith.constant 2 : i32
      %63 = vector.broadcast %c2_i32 : i32 to vector<1x8x128xi32>
      %64 = arith.cmpi eq, %58, %63 : vector<1x8x128xi32>
      %cst_35 = arith.constant 0.000000e+00 : f32
      %65 = vector.broadcast %57 : f32 to vector<1x8x128xf32>
      %66 = vector.broadcast %cst_35 : f32 to vector<1x8x128xf32>
      %67 = arith.select %64, %65, %66 : vector<1x8x128xi1>, vector<1x8x128xf32>
      %68 = vector.broadcast %52 : f32 to vector<1x8x128xf32>
      %69 = arith.select %62, %68, %67 : vector<1x8x128xi1>, vector<1x8x128xf32>
      %70 = vector.broadcast %47 : f32 to vector<1x8x128xf32>
      %71 = arith.select %60, %70, %69 : vector<1x8x128xi1>, vector<1x8x128xf32>
      %c0_36 = arith.constant 0 : index
      %c0_37 = arith.constant 0 : index
      %c0_38 = arith.constant 0 : index
      %72 = vector.load %arg4[%c0_36, %c0_37, %c0_38] : memref<1x8x128xf32, #tpu.memory_space<vmem>>, vector<1x8x128xf32>
      tpu.vector_store %arg4[%c0_36, %c0_37, %c0_38], %71 {strides = array<i32>} : memref<1x8x128xf32, #tpu.memory_space<vmem>>, vector<1x8x128xf32>,
    } else {
    }
    return
  }
  func.func @transform_0(%arg0: i32, %arg1: i32) -> (i32, i32) {
    %c1_i32 = arith.constant 1 : i32
    %0 = arith.muli %arg0, %c1_i32 : i32
    %1 = arith.addi %0, %arg1 : i32
    %c0_i32 = arith.constant 0 : i32
    %c0_i32_0 = arith.constant 0 : i32
    return %1, %c0_i32 : i32, i32
  }
  func.func @transform_1(%arg0: i32, %arg1: i32) -> (i32, i32) {
    %c1_i32 = arith.constant 1 : i32
    %0 = arith.muli %arg0, %c1_i32 : i32
    %1 = arith.addi %0, %arg1 : i32
    %c0_i32 = arith.constant 0 : i32
    %c0_i32_0 = arith.constant 0 : i32
    return %1, %c0_i32 : i32, i32
  }
  func.func @transform_2(%arg0: i32, %arg1: i32) -> (i32, i32, i32) {
    %c0_i32 = arith.constant 0 : i32
    %c0_i32_0 = arith.constant 0 : i32
    %c0_i32_1 = arith.constant 0 : i32
    return %arg0, %c0_i32, %c0_i32_0 : i32, i32, i32
  }
}

</mosaic_0001>

<bundles_post_ra>
// kernel: tpu_custom_call.1
= control target key start
LH: loop header
LB: loop body
LE: loop exit
PB: predicated region body
PF: predicated region fallthrough
CT: control target
= control target key end

     0   :  { %7 = vsyncpa [#allocation6], 0  ;;  %s910_s0 = inlined_call_operand.hbm [shape: f32[16,128], index: 0, kind: input, shape index: {}]   ;;  %s911_s1 = inlined_call_operand.hbm [shape: f32[16,128], index: 1, kind: input, shape index: {}]   ;;  %s912_s2 = inlined_call_operand.hbm [shape: f32[2,8,128], index: 2, kind: output, shape index: {}]  }
   0x1   :  { %9 = vsyncpa [#allocation6 + $0x1], 0 }
   0x2   :  { %10 = vsyncpa [#allocation9], 0 }
   0x3   :  { %12 = vsyncpa [#allocation9 + $0x1], 0 }
   0x4   :  { %13 = vsyncpa [#allocation7], 0 }
   0x5   :  { %15 = vsyncpa [#allocation7 + $0x1], 0  ;;  %s685_s9 = smov 0   ;;  %s687_s10 = smov 0  }
   0x6   :  { %s689_s11 = smov 0   ;;  %s691_s12 = smov 0  }
   0x7   :  { %s693_s13 = smov 0   ;;  %s695_s14 = smov 0  }
   0x8 LB: > { %s424_s15 = sadd.s32 4294967295, %s665_s14   ;;  %s425_s16 = sadd.s32 4294967294, %s665_s14   ;;  %s665_s14 = sphi %s695_s14, %s21_s14   ;;  %s661_s13 = sphi %s693_s13, %s932_s13   ;;  %s657_s12 = sphi %s691_s12, %s931_s12   ;;  %s653_s11 = sphi %s689_s11, %s930_s11   ;;  %s649_s10 = sphi %s687_s10, %s929_s10   ;;  %s645_s9 = sphi %s685_s9, %s928_s9  }
   0x9   : > { %s33_s17 = sadd.s32 1, %s661_s13  ;;  %s42_s18 = sadd.s32 1, %s653_s11 }
   0xa   : > { %p35_p0 = scmp.ge.s32.totalorder %s33_s17, 2  ;;  %p49_p1 = scmp.ne.s32.totalorder %s653_s11, %s649_s10 }
   0xb   : > { %p50_p2 = scmp.eq.s32.totalorder %s665_s14, 0  ;;  %p55_p3 = scmp.ne.s32.totalorder %s649_s10, %s645_s9 }
   0xc   : > { %s934_s17 = smov (%p35_p0, %s33_s17), 0  ;;  %p56_p5 = scmp.eq.s32.totalorder %s424_s15, 0 }
   0xd   : > { %p726_p4 = por %p50_p2, %p49_p1  ;;  %s39_s20 = ssub.s32 %s661_s13, %s934_s17 }
   0xe   : > { %p107_p6 = scmp.eq.s32.totalorder %s424_s15, 1  ;;  %p40_p7 = scmp.eq.s32.totalorder %s39_s20, 0 }
   0xf   : > { %p732_p8 = por %p56_p5, %p55_p3  ;;  %p113_p10 = scmp.eq.s32.totalorder %s425_s16, 1 }
  0x10   : > { %p736_p9 = por %p107_p6, %p49_p1  ;;  %p463_p13 = scmp.lt.s32.totalorder %s665_s14, 2 }
  0x11   : > { %s916_s21 = scalar_select %p732_p8, 1, 0 }
  0x12   : > { %s917_s22 = scalar_select %p736_p9, 1, 0 }
  0x13   : > { %s741_s23 = scalar_select %p40_p7, %s653_s11, %s42_s18  }
  0x14   : > { %p743_p11 = por %p113_p10, %p55_p3  ;;  %s750_s25 = sand.u32 1, %s653_s11  }
  0x15   : > { %s428_s26 = sshll.u32 %s750_s25, 3  ;;  %s429_s27 = sshll.u32 %s661_s13, 7 }
  0x16   : > { %s918_s24 = scalar_select %p743_p11, 1, 0 }
  0x17   : > { %s759_s30 = scalar_lea.hbm %s910_s0, %s429_s27  ;;  %s137_s3 = scalar_lea.vmem [#allocation5], %s428_s26 }
  0x18   : > { %s145_s4 = sshll.u32 %s137_s3, 4  ;;  %p767_p0 = pnand %p463_p13, %p726_p4  ;;  %s763_s4 = int_to_ptr.vmem [resolvable:$true] %s145_s4 }
  0x19   : > { %s134_s6 = scalar_lea.sflag [#allocation6], %s750_s25  ;;  %s519_s7 = scalar_lea.hbm %s759_s30, 128 }
  0x1a   : > { %p520_p3 = scmp.ne.s32.totalorder %s759_s30, %s519_s7  ;;  %p521_p5 = pneg %p767_p0 }
  0x1b   : > { %s524_s16 = scalar_lea.hbm %s910_s0, 256  ;;  %p525_p4 = scmp.lt.u32.totalorder %s759_s30, %s910_s0 }
  0x1c   : > { %p522_p6 = pnand %p521_p5, %p520_p3  ;;  %p526_p10 = scmp.lt.u32.totalorder %s524_s16, %s519_s7 }
  0x1d   : > { %p528_p12 = scmp.lt.u32.totalorder %s519_s7, %s759_s30 }
  0x1e   : > { %p523_p7 = pneg %p522_p6  ;;  %p527_p13 = por %p526_p10, %p525_p4 }
  0x20   : > { %p529_p1 = por %p528_p12, %p527_p13 }
  0x22   : > { %p530_p2 = pnand %p529_p1, %p523_p7 }
  0x24   : > { %533 = shalt.err (!%p530_p2)
}
  0x25   : > { %s534_s20 = scalar_lea.vmem %s763_s4, 128  ;;  %s667_s28 = smov [#allocation5]  }
  0x26   : > { %p535_p3 = scmp.ne.s32.totalorder %s763_s4, %s534_s20  ;;  %s539_s29 = sshll.u32 %s667_s28, 4  ;;  %s540_s29 = int_to_ptr.vmem [resolvable:$false] %s539_s29 }
  0x27   : > { %s541_s3 = scalar_lea.vmem %s540_s29, 256  ;;  %p542_p9 = scmp.lt.s32.totalorder %s763_s4, %s540_s29 }
  0x28   : > { %p537_p6 = pnand %p535_p3, %p521_p5  ;;  %p543_p4 = scmp.lt.s32.totalorder %s541_s3, %s534_s20 }
  0x2a   : > { %p538_p11 = pneg %p537_p6  ;;  %p544_p10 = por %p543_p4, %p542_p9 }
  0x2c   : > { %p545_p12 = pnand %p544_p10, %p538_p11 }
  0x2e   : > { %548 = shalt.err (!%p545_p12)
}
  0x2f   : > { %455 = dma.hbm_to_vmem [thread:$0]  (!%p767_p0), %s759_s30, 128, %s763_s4, %s134_s6  }
  0x30   : > { %p920_p1 = scmp.lt.s32.totalorder %s665_s14, 3  ;;  %p921_p2 = scmp.ge.s32.totalorder %s665_s14, 1 }
  0x31   : > { %s812_s16 = scalar_lea.hbm %s911_s1, %s429_s27  ;;  %s156_s18 = scalar_lea.vmem [#allocation8], %s428_s26 }
  0x32   : > { %p803_p7 = pnand %p921_p2, %p920_p1  ;;  %s164_s19 = sshll.u32 %s156_s18, 4  ;;  %s165_s19 = int_to_ptr.vmem [resolvable:$true] %s164_s19 }
  0x33   : > { %s153_s30 = scalar_lea.sflag [#allocation9], %s750_s25  ;;  %s549_s4 = scalar_lea.hbm %s812_s16, 128 }
  0x34   : > { %s922_s7 = scalar_select %p803_p7, 1, 0 }
  0x35   : > { %p550_p9 = scmp.ne.s32.totalorder %s812_s16, %s549_s4  ;;  %s554_s27 = scalar_lea.hbm %s911_s1, 256 }
  0x36   : > { %p555_p3 = scmp.lt.u32.totalorder %s812_s16, %s911_s1  ;;  %p556_p6 = scmp.lt.u32.totalorder %s554_s27, %s549_s4 }
  0x37   : > { %p552_p11 = pnand %p550_p9, %p521_p5  ;;  %p558_p10 = scmp.lt.u32.totalorder %s549_s4, %s812_s16 }
  0x38   : > { %p557_p4 = por %p556_p6, %p555_p3 }
  0x39   : > { %p553_p13 = pneg %p552_p11 }
  0x3a   : > { %p559_p12 = por %p558_p10, %p557_p4 }
  0x3c   : > { %p560_p1 = pnand %p559_p12, %p553_p13 }
  0x3e   : > { %563 = shalt.err (!%p560_p1)
}
  0x3f   : > { %s564_s25 = scalar_lea.vmem %s165_s19, 128  ;;  %s668_s26 = smov [#allocation8]  }
  0x40   : > { %p565_p2 = scmp.ne.s32.totalorder %s165_s19, %s564_s25  ;;  %s569_s3 = sshll.u32 %s668_s26, 4  ;;  %s570_s3 = int_to_ptr.vmem [resolvable:$false] %s569_s3 }
  0x41   : > { %s571_s8 = scalar_lea.vmem %s570_s3, 256  ;;  %p572_p8 = scmp.lt.s32.totalorder %s165_s19, %s570_s3 }
  0x42   : > { %p567_p9 = pnand %p565_p2, %p521_p5  ;;  %p573_p7 = scmp.lt.s32.totalorder %s571_s8, %s564_s25 }
  0x44   : > { %p568_p11 = pneg %p567_p9  ;;  %p574_p3 = por %p573_p7, %p572_p8 }
  0x46   : > { %p575_p6 = pnand %p574_p3, %p568_p11 }
  0x48   : > { %578 = shalt.err (!%p575_p6)
}
  0x49   : > { %458 = dma.hbm_to_vmem [thread:$0]  (!%p767_p0), %s812_s16, 128, %s165_s19, %s153_s30  }
  0x4a   : > { %p923_p13 = scmp.ne.s32.totalorder %s922_s7, 0 }
  0x4b   : > { %s839_s15 = sand.u32 (!%p923_p13), 1, %s649_s10   ;;  %p924_p8 = scmp.ne.s32.totalorder (!%p923_p13), %s916_s21, 0 }
  0x4c   : > { %173 = sbr.rel (%p923_p13) target bundleno = 350 (0x15e), region = 28  ;;  %s842_s18 = sshll.u32 (!%p923_p13), %s839_s15, 3 }
  0x4d   : > { %s176_s4 = scalar_lea.sflag (!%p923_p13), [#allocation6], %s839_s15  ;;  %s179_s6 = scalar_lea.vmem (!%p923_p13), [#allocation5], %s842_s18 }
  0x53   : > { %632 = dma.done.wait (%p924_p8), %s176_s4, 128  }
  0x54   : > { %634 = vsyncadd (%p924_p8), %s176_s4, 4294967168  ;;  %s185_s5 = scalar_lea.sflag [#allocation9], %s839_s15  ;;  %s188_s7 = scalar_lea.vmem [#allocation8], %s842_s18 }
  0x55   : > { %636 = dma.done.wait (%p924_p8), %s185_s5, 128  }
  0x56   : > { %638 = vsyncadd (%p924_p8), %s185_s5, 4294967168  ;;  %v223_v0 = vld [vmem:[%s179_s6] sm:$0xff]  ;;  %v224_v7 = vld [vmem:[%s188_s7] sm:$0xff]  ;;  %v295_v44 = vlaneseq  ;;  %s437_s19 = sshll.u32 %s657_s12, 7  ;;  %s213_s20 = scalar_lea.vmem [#allocation10], %s842_s18 }
  0x57   : > { %v225_v1 = vand.u32 2147483647, %v223_v0  ;;  %v235_v9 = vmax.f32 %v223_v0, 0.0  ;;  %v236_v10 = vmul.f32 %v224_v7, %v223_v0  ;;  %vm232_vm1 = vcmp.ge.f32.partialorder %v223_v0, 0.0  ;;  %s321_s27 = sshll.u32 %s213_s20, 4  ;;  %s861_s25 = scalar_lea.hbm %s912_s2, %s437_s19  ;;  %s863_s27 = int_to_ptr.vmem [resolvable:$true] %s321_s27 }
  0x58   : > { %v296_v45 = vshrl.u32 %v295_v44, 7  ;;  %s308_s12 = scalar_lea.sflag [#allocation7], %s839_s15  ;;  %s579_s26 = scalar_lea.vmem %s863_s27, 128 }
  0x59   : > { %v226_v2 = vsub.f32 0.0, %v225_v1  ;;  %v237_v14 = vsub.f32 %v235_v9, %v236_v10  ;;  %p580_p0 = scmp.ne.s32.totalorder %s863_s27, %s579_s26  ;;  %p925_p5 = scmp.ne.s32.totalorder %s917_s22, 0 }
  0x5a   : > { %vm299_vm2 = vcmp.eq.s32.totalorder %v296_v45, 2  ;;  %vm298_vm3 = vcmp.eq.s32.totalorder %v296_v45, 1  ;;  %vm297_vm4 = vcmp.eq.s32.totalorder %v296_v45, 0  ;;  %s669_s3 = smov [#allocation10]  }
  0x5b   : > { %v227_v3 = vmul.f32 1.442695, %v226_v2  ;;  %p581_p7 = pnand %p580_p0, %p925_p5  ;;  %s583_s8 = sshll.u32 %s669_s3, 4  ;;  %s584_s8 = int_to_ptr.vmem [resolvable:$false] %s583_s8 }
  0x5c   : > { %s585_s18 = scalar_lea.vmem %s584_s8, 256  ;;  %p586_p10 = scmp.lt.s32.totalorder %s863_s27, %s584_s8 }
  0x5d   : > { %513 = vpow2.f32 %v227_v3  ;;  %p582_p4 = pneg %p581_p7  ;;  %p587_p12 = scmp.lt.s32.totalorder %s585_s18, %s579_s26 }
  0x5f   : > { %p588_p1 = por %p587_p12, %p586_p10 }
  0x61   : > { %p589_p2 = pnand %p588_p1, %p582_p4 }
  0x67   : > { %v514_v4 = vpop.eup %513 }
  0x68   : > { %v229_v5 = vadd.f32 1.0, %v514_v4  ;;  %v241_v6 = vmul.f32 -0.5, %v514_v4  ;;  %v244_v11 = vand.u32 2147483647, %v514_v4 }
  0x6a   : > { %515 = vlog2.f32 %v229_v5  ;;  %v242_v8 = vadd.f32 1.0, %v241_v6  ;;  %vm245_vm0 = vcmp.lt.f32.partialorder %v244_v11, 0.0004427343 }
  0x6b   : > { %517 = vrcp.f32 %v229_v5 }
  0x6c   : > { %v243_v12 = vmul.f32 %v514_v4, %v242_v8 }
  0x74   : > { %v516_v13 = vpop.eup %515 }
  0x75   : > { %v518_v15 = vpop.eup %517  ;;  %v240_v16 = vmul.f32 0.6931472, %v516_v13 }
  0x76   : > { %v233_v17 = vmul.f32 %v518_v15, %v514_v4 }
  0x77   : > { %v246_v18 = vsel %vm245_vm0, %v243_v12, %v240_v16 }
  0x78   : > { %v247_v19 = vadd.f32 %v246_v18, %v237_v14  ;;  %v234_v20 = vsel %vm232_vm1, %v518_v15, %v233_v17 }
  0x79   : > { %v249_v21 = vmul.f32 %v234_v20, %v224_v7  ;;  %v254_v22 = vadd.f32 %v234_v20, %v224_v7 }
  0x7a   : > { %286 = vadd.xlane.f32.xlu1 %v247_v19 }
  0x7b   : > { %266 = vadd.xlane.f32.xlu0 %v249_v21 }
  0x7f   : > { %276 = vadd.xlane.f32.xlu0 %v254_v22 }
 0x107   : > { %v287_v23 = vpop.xlane.xlu1 %286 }
 0x108   : > { %v288_v24 = vrot.slane %v287_v23, 4  ;;  %v267_v25 = vpop.xlane.xlu0 %266 }
 0x109   : > { %v268_v26 = vrot.slane %v267_v25, 4 }
 0x10a   : > { %v289_v27 = vadd.f32 %v288_v24, %v287_v23 }
 0x10b   : > { %v269_v28 = vadd.f32 %v268_v26, %v267_v25 }
 0x10c   : > { %v290_v29 = vrot.slane %v289_v27, 2  ;;  %v277_v30 = vpop.xlane.xlu0 %276 }
 0x10d   : > { %v270_v31 = vrot.slane %v269_v28, 2  ;;  %v278_v32 = vrot.slane %v277_v30, 4 }
 0x10e   : > { %v291_v35 = vadd.f32 %v290_v29, %v289_v27 }
 0x10f   : > { %v279_v33 = vadd.f32 %v278_v32, %v277_v30  ;;  %v271_v34 = vadd.f32 %v270_v31, %v269_v28 }
 0x110   : > { %v292_v40 = vrot.slane %v291_v35, 1 }
 0x111   : > { %v280_v36 = vrot.slane %v279_v33, 2  ;;  %v272_v37 = vrot.slane %v271_v34, 1 }
 0x112   : > { %v293_v43 = vadd.f32 %v292_v40, %v291_v35 }
 0x113   : > { %v281_v38 = vadd.f32 %v280_v36, %v279_v33  ;;  %v273_v39 = vadd.f32 %v272_v37, %v271_v34 }
 0x115   : > { %440 = vpush %v273_v39  ;;  %v282_v41 = vrot.slane %v281_v38, 1 }
 0x117   : > { %v283_v42 = vadd.f32 %v282_v41, %v281_v38 }
 0x119   : > { %442 = vpush %v283_v42 }
 0x11a   : > { %444 = vpush %v293_v43 }
 0x146   : > { %s441_s21 = spop %440 }
 0x147   : > { %v304_v49 = vstv %s441_s21 }
 0x14a   : > { %s443_s16 = spop %442 }
 0x14b   : > { %v302_v46 = vstv %s443_s16  ;;  %s445_s30 = spop %444 }
 0x14c   : > { %v300_v47 = vstv %s445_s30 }
 0x14d   : > { %v301_v48 = vsel %vm299_vm2, %v300_v47, 0.0 }
 0x14e   : > { %v303_v50 = vsel %vm298_vm3, %v302_v46, %v301_v48 }
 0x14f   : > { %v305_v51 = vsel %vm297_vm4, %v304_v49, %v303_v50 }
 0x150   : > { %306 = vst [vmem:[%s213_s20] sm:$0xff] %v305_v51 }
 0x151   : > { %592 = shalt.err (!%p589_p2)
}
 0x152   : > { %s593_s15 = scalar_lea.hbm %s861_s25, 128  ;;  %s597_s5 = scalar_lea.hbm %s912_s2, 256 }
 0x153   : > { %p594_p9 = scmp.ne.s32.totalorder %s861_s25, %s593_s15  ;;  %p598_p6 = scmp.lt.u32.totalorder %s861_s25, %s912_s2 }
 0x154   : > { %p599_p13 = scmp.lt.u32.totalorder %s597_s5, %s593_s15  ;;  %p601_p0 = scmp.lt.u32.totalorder %s593_s15, %s861_s25 }
 0x155   : > { %p595_p11 = pnand %p594_p9, %p925_p5 }
 0x156   : > { %p600_p8 = por %p599_p13, %p598_p6 }
 0x157   : > { %p596_p3 = pneg %p595_p11 }
 0x158   : > { %p602_p7 = por %p601_p0, %p600_p8 }
 0x15a   : > { %p603_p4 = pnand %p602_p7, %p596_p3 }
 0x15c   : > { %606 = shalt.err (!%p603_p4)
}
 0x15d   : > { %450 = dma.vmem_to_hbm [thread:$0]  (%p925_p5), %s863_s27, 128, %s861_s25, %s308_s12  }
 0x15e PF: > { %s333_s16 = sand.u32 1, %s645_s9   ;;  %p926_p10 = scmp.ne.s32.totalorder %s918_s24, 0 }
 0x15f   : > { %p927_p12 = scmp.ge.s32.totalorder %s665_s14, 2  ;;  %s334_s19 = scalar_lea.sflag [#allocation7], %s333_s16 }
 0x161   : > { %p460_p1 = pnand %p927_p12, %p926_p10 }
 0x163   : > { %640 = dma.done.wait (!%p460_p1), %s334_s19, 128  }
 0x164   : > { %642 = vsyncadd (!%p460_p1), %s334_s19, 4294967168  ;;  %s21_s14 = sadd.s32 1, %s665_s14   ;;  %s928_s9 = smov %s649_s10 }
 0x165   : > { %p18_p2 = scmp.ge.s32.totalorder %s21_s14, 4   ;;  %s929_s10 = smov %s653_s11 }
 0x166   : > { %s930_s11 = smov %s741_s23  ;;  %s931_s12 = smov %s661_s13 }
 0x167   : > { %s932_s13 = smov %s934_s17  ;;  %20 = sbr.rel (!%p18_p2) target bundleno = 8 (0x8), region = 94 }
 0x16e   :  { %339 = vsyncpa [#allocation6], 1 }
 0x16f   :  { %341 = vsyncpa [#allocation6 + $0x1], 1 }
 0x170   :  { %342 = vsyncpa [#allocation9], 1 }
 0x171   :  { %344 = vsyncpa [#allocation9 + $0x1], 1 }
 0x172   :  { %345 = vsyncpa [#allocation7], 1 }
 0x173   :  { %347 = vsyncpa [#allocation7 + $0x1], 1 }

</bundles_post_ra>
